<compile_context>
chip_gen: v6e
topology: v6e:2x2x1
jax: 0.10.0
libtpu: 0.0.40
codegen_flags: <defaults>
</compile_context>

<pallas_src>
import functools

import jax
import jax.numpy as jnp
from jax.experimental import pallas as pl
from jax.experimental.pallas import tpu as pltpu

LANES = 128
_SQRT3 = 1.7320508075688772


def _i32_const(v):
    """Python int -> int32-representable value (two's-complement wrap)."""
    v &= 0xFFFFFFFF
    if v >= 0x80000000:
        v -= 0x100000000
    return v


_MIX_M1 = _i32_const(0x7FEB352D)   # lowbias32 multipliers
_MIX_M2 = _i32_const(0x846CA68B)
_GOLDEN = _i32_const(0x9E3779B9)
_SALT0 = _i32_const(0x85EBCA6B)
_SALT1 = _i32_const(0xC2B2AE35)


def _srl(x, n):
    """Logical right shift for int32 via arithmetic shift + mask (VPU-only)."""
    mask = jnp.int32((1 << (32 - n)) - 1)
    return jnp.bitwise_and(jnp.right_shift(x, n), mask)


def _mix32(x):
    """lowbias32 integer finalizer: good avalanche, only int32 VPU ops."""
    x = jnp.bitwise_xor(x, _srl(x, 16))
    x = x * jnp.int32(_MIX_M1)
    x = jnp.bitwise_xor(x, _srl(x, 15))
    x = x * jnp.int32(_MIX_M2)
    x = jnp.bitwise_xor(x, _srl(x, 16))
    return x


# ----------------------------------------------------------------------------
# Kernel 1: streaming global statistics (only the ones noise_range needs).
# ----------------------------------------------------------------------------
def _stats_kernel(x_ref, out_ref, *accs, need_max, need_min, need_moments,
                  last_tile_valid):
    """out_ref (SMEM f32[4]) = [max, min, sum, sum_sq]; unused slots are 0."""
    i = pl.program_id(0)
    nsteps = pl.num_programs(0)

    accs = list(accs)
    max_acc = accs.pop(0) if need_max else None
    min_acc = accs.pop(0) if need_min else None
    sum_acc = accs.pop(0) if need_moments else None
    sq_acc = accs.pop(0) if need_moments else None

    @pl.when(i == 0)
    def _():
        if need_max:
            max_acc[...] = jnp.full_like(max_acc, -jnp.inf)
        if need_min:
            min_acc[...] = jnp.full_like(min_acc, jnp.inf)
        if need_moments:
            sum_acc[...] = jnp.zeros_like(sum_acc)
            sq_acc[...] = jnp.zeros_like(sq_acc)

    x = x_ref[...].astype(jnp.float32)
    tm, tn = x.shape

    if need_moments:
        # Zero padding of the tail is harmless for sum / sum-of-squares.
        sum_acc[...] = sum_acc[...] + x
        sq_acc[...] = sq_acc[...] + x * x

    if need_max or need_min:
        if last_tile_valid == tm * tn:
            # No padded tail anywhere: unmasked fast path on every step.
            if need_max:
                max_acc[...] = jnp.maximum(max_acc[...], x)
            if need_min:
                min_acc[...] = jnp.minimum(min_acc[...], x)
        else:
            @pl.when(i != nsteps - 1)
            def _():
                if need_max:
                    max_acc[...] = jnp.maximum(max_acc[...], x)
                if need_min:
                    min_acc[...] = jnp.minimum(min_acc[...], x)

            @pl.when(i == nsteps - 1)
            def _():
                row = jax.lax.broadcasted_iota(jnp.int32, (tm, tn), 0)
                col = jax.lax.broadcasted_iota(jnp.int32, (tm, tn), 1)
                valid = (row * tn + col) < last_tile_valid
                if need_max:
                    max_acc[...] = jnp.maximum(
                        max_acc[...], jnp.where(valid, x, -jnp.inf))
                if need_min:
                    min_acc[...] = jnp.minimum(
                        min_acc[...], jnp.where(valid, x, jnp.inf))

    @pl.when(i == nsteps - 1)
    def _():
        out_ref[0] = jnp.max(max_acc[...]) if need_max else jnp.float32(0.0)
        out_ref[1] = jnp.min(min_acc[...]) if need_min else jnp.float32(0.0)
        out_ref[2] = jnp.sum(sum_acc[...]) if need_moments else jnp.float32(0.0)
        out_ref[3] = jnp.sum(sq_acc[...]) if need_moments else jnp.float32(0.0)


# ----------------------------------------------------------------------------
# Kernel 2: hash-based clamped gaussian noise + apply (single HBM pass).
# ----------------------------------------------------------------------------
def _noise_kernel(seed_ref, scale_ref, x_ref, o_ref, *, method, tile_elems):
    i = pl.program_id(0)
    tm, tn = x_ref.shape
    x = x_ref[...].astype(jnp.float32)

    # Global flat element index of every element of this tile (tiling-invariant).
    row = jax.lax.broadcasted_iota(jnp.int32, (tm, tn), 0)
    col = jax.lax.broadcasted_iota(jnp.int32, (tm, tn), 1)
    idx = i * tile_elems + row * tn + col

    seed = seed_ref[0] * jnp.int32(_GOLDEN)
    h0 = _mix32(jnp.bitwise_xor(idx, seed + jnp.int32(_SALT0)))
    h1 = _mix32(jnp.bitwise_xor(idx, seed + jnp.int32(_SALT1)))

    # Four 16-bit uniforms per element -> Irwin-Hall(4) ~ N(0,1), clamp [-3,3].
    # TODO(synk): approximation of torch.randn_like (exact Box-Muller / torch
    # RNG stream is not reproducible in-kernel; distribution quality is what
    # matters for noise-injection simulation).
    mask16 = jnp.int32(0xFFFF)
    acc = (jnp.bitwise_and(h0, mask16) + _srl(h0, 16)
           + jnp.bitwise_and(h1, mask16) + _srl(h1, 16))
    noise = (acc.astype(jnp.float32) * jnp.float32(1.0 / 65536.0)
             - jnp.float32(2.0)) * jnp.float32(_SQRT3)
    noise = jnp.clip(noise, -3.0, 3.0)

    scale = scale_ref[0]
    if method == 'add':
        out = x + noise * scale
    elif method == 'mul':
        out = x * (noise * scale + jnp.float32(1.0))
    else:
        raise ValueError(f'unknown noise method: {method}')
    o_ref[...] = out.astype(o_ref.dtype)


# ----------------------------------------------------------------------------
# Wrapper
# ----------------------------------------------------------------------------
def _pick_tile_rows(n, itemsize, max_tile_rows):
    # Sublane multiple depends on dtype packing: f32 -> 8, bf16 -> 16, int8 -> 32.
    sub = max(8, 32 // max(int(itemsize), 1))
    rows = -(-n // LANES)
    rows_aligned = -(-rows // sub) * sub
    return max(sub, min((int(max_tile_rows) // sub) * sub, rows_aligned))


def _flatten_pad(x, tile_rows):
    n = x.size
    rows = -(-n // LANES)
    rows_p = -(-rows // tile_rows) * tile_rows
    pad = rows_p * LANES - n
    flat = x.reshape(-1)
    if pad:  # static; skipped entirely when the shape already tiles cleanly
        flat = jnp.pad(flat, (0, pad))
    return flat.reshape(rows_p, LANES), rows_p


def _noisy_forward_impl(x, noise_scale, noise_method, noise_range, seed,
                        max_tile_rows):
    orig_shape = x.shape
    orig_dtype = x.dtype
    n = x.size

    tile_rows = _pick_tile_rows(n, jnp.dtype(orig_dtype).itemsize, max_tile_rows)
    x2d, rows_p = _flatten_pad(x, tile_rows)
    num_tiles = rows_p // tile_rows
    tile_elems = tile_rows * LANES
    last_tile_valid = n - (num_tiles - 1) * tile_elems   # static Python int
    grid = (num_tiles,)

    block = pl.BlockSpec((tile_rows, LANES), lambda i: (i, 0))
    smem = pl.BlockSpec(memory_space=pltpu.MemorySpace.SMEM)

    if noise_method == 'add':
        need_max = noise_range in ('max', 'max_min', 'maxabs_2')
        need_min = noise_range in ('max_min', 'maxabs_2')
        need_moments = noise_range == 'std'
        if not (need_max or need_min or need_moments):
            raise ValueError(f'unknown noise range: {noise_range}')

        n_acc = int(need_max) + int(need_min) + 2 * int(need_moments)
        scratch = [pltpu.VMEM((tile_rows, LANES), jnp.float32)] * n_acc

        stats = pl.pallas_call(
            functools.partial(_stats_kernel, need_max=need_max,
                              need_min=need_min, need_moments=need_moments,
                              last_tile_valid=last_tile_valid),
            out_shape=jax.ShapeDtypeStruct((4,), jnp.float32),
            grid_spec=pltpu.PrefetchScalarGridSpec(
                num_scalar_prefetch=0,
                grid=grid,
                in_specs=[block],
                out_specs=smem,
                scratch_shapes=scratch),
            compiler_params=pltpu.CompilerParams(
                dimension_semantics=("arbitrary",)),
        )(x2d)

        mx, mn, s, ss = stats[0], stats[1], stats[2], stats[3]
        if noise_range == 'max':
            factor = mx
        elif noise_range == 'std':
            # torch.std() default is unbiased (ddof=1).
            count = jnp.float32(n)
            mean = s / count
            var = jnp.maximum(ss - count * mean * mean, 0.0)
            var = var / jnp.maximum(count - 1.0, 1.0)
            factor = jnp.sqrt(var)
        elif noise_range == 'max_min':
            factor = mx - mn
        else:  # 'maxabs_2'
            factor = 2.0 * jnp.maximum(jnp.abs(mx), jnp.abs(mn))
        scale = factor * jnp.float32(noise_scale)
    elif noise_method == 'mul':
        # The reference 'mul' path ignores the range factor.
        scale = jnp.float32(noise_scale)
    else:
        raise ValueError(f'unknown noise method: {noise_method}')

    scale_arr = jnp.reshape(scale, (1,)).astype(jnp.float32)
    seed_arr = jnp.full((1,), seed, jnp.int32)

    out2d = pl.pallas_call(
        functools.partial(_noise_kernel, method=noise_method,
                          tile_elems=tile_elems),
        out_shape=jax.ShapeDtypeStruct(x2d.shape, orig_dtype),
        grid_spec=pltpu.PrefetchScalarGridSpec(
            num_scalar_prefetch=0,
            grid=grid,
            in_specs=[smem, smem, block],
            out_specs=block),
        compiler_params=pltpu.CompilerParams(
            dimension_semantics=("parallel",)),
    )(seed_arr, scale_arr, x2d)

    out = out2d.reshape(-1)
    if out.shape[0] != n:
        out = out[:n]
    return out.reshape(orig_shape)


# Straight-through estimator via custom_vjp: forward value = noisy output,
# gradient w.r.t. x = identity (matches (x_noise - x).detach() + x) with zero
# additional forward-pass HBM traffic.
@functools.partial(jax.custom_vjp, nondiff_argnums=(1, 2, 3, 4, 5))
def _noisy_forward(x, noise_scale, noise_method, noise_range, seed,
                   max_tile_rows):
    return _noisy_forward_impl(x, noise_scale, noise_method, noise_range,
                               seed, max_tile_rows)


def _noisy_fwd(x, noise_scale, noise_method, noise_range, seed, max_tile_rows):
    return _noisy_forward_impl(x, noise_scale, noise_method, noise_range,
                               seed, max_tile_rows), None


def _noisy_bwd(noise_scale, noise_method, noise_range, seed, max_tile_rows,
               _res, g):
    return (g,)


_noisy_forward.defvjp(_noisy_fwd, _noisy_bwd)


def noquan_forward(x, *, noise_scale=0.0, noise_method='add',
                   noise_range='max', int_flag=False, seed=0,
                   max_tile_rows=1024):
    """JAX/Pallas equivalent of NoQuan.forward."""
    if int_flag:
        raise ValueError('NoQuan cannot support int_flag:True. ')
    if noise_scale == 0:
        return x
    return _noisy_forward(x, float(noise_scale), str(noise_method),
                          str(noise_range), int(seed), int(max_tile_rows))


class NoQuan:
    """Parameter-free module mirroring the PyTorch NoQuan module."""

    def __init__(self, bit=None, noise_scale=0, noise_method='add',
                 noise_range='max', int_flag=False, *args, **kwargs):
        self.noise_scale = noise_scale
        self.noise_method = noise_method
        self.noise_range = noise_range
        self.int_flag = int_flag

    def __call__(self, x, seed=0):
        return noquan_forward(x,
                              noise_scale=self.noise_scale,
                              noise_method=self.noise_method,
                              noise_range=self.noise_range,
                              int_flag=self.int_flag,
                              seed=seed)

    def get_quant_params(self):
        return {'quant_name': 'None',
                'noise_scale': self.noise_scale,
                'noise_method': self.noise_method,
                'noise_range': self.noise_range}

    def get_int(self, x):
        return (x, 1)


if __name__ == "__main__":
    key = jax.random.PRNGKey(0)
    # NCHW-like activation tensor (the op is elementwise / shape-agnostic).
    x = jax.random.normal(key, (2, 4, 16, 16), dtype=jnp.float32)

    # Path 1: default NoQuan (noise_scale=0) -> identity, no kernel launched.
    ident = jax.block_until_ready(NoQuan()(x))
    assert ident.shape == x.shape and ident.dtype == x.dtype
    assert bool(jnp.all(ident == x))

    # Path 2: additive noise, range='max' (stats + noise kernels).
    mod = NoQuan(noise_scale=0.074, noise_method='add', noise_range='max')
    y = jax.block_until_ready(mod(x, seed=1234))
    assert y.shape == x.shape and y.dtype == x.dtype
    assert bool(jnp.all(jnp.isfinite(y)))
    bound = 3.0 * float(jnp.max(x)) * 0.074 + 1e-4
    assert float(jnp.max(jnp.abs(y - x))) <= bound
    # Noise depends only on (seed, global element index): re-tiling the same
    # problem with tiny tiles must reproduce the same output.
    y_small = jax.block_until_ready(
        noquan_forward(x, noise_scale=0.074, noise_method='add',
                       noise_range='max', seed=1234, max_tile_rows=8))
    assert bool(jnp.allclose(y, y_small))

    # Path 3: multiplicative noise (no stats kernel).
    mod_mul = NoQuan(noise_scale=0.05, noise_method='mul', noise_range='std')
    z = jax.block_until_ready(mod_mul(x, seed=7))
    assert z.shape == x.shape
    assert bool(jnp.all(jnp.isfinite(z)))
    assert float(jnp.max(jnp.abs(z - x) - 3.0 * 0.05 * jnp.abs(x))) <= 1e-4

    # Path 4: 'maxabs_2' range with ragged size (105 elems) -> masked tail path.
    x3 = jax.random.normal(jax.random.PRNGKey(1), (3, 5, 7), dtype=jnp.float32)
    w = jax.block_until_ready(
        noquan_forward(x3, noise_scale=0.1, noise_method='add',
                       noise_range='maxabs_2', seed=42))
    assert w.shape == x3.shape and bool(jnp.all(jnp.isfinite(w)))
    bound3 = 3.0 * 2.0 * float(jnp.max(jnp.abs(x3))) * 0.1 + 1e-4
    assert float(jnp.max(jnp.abs(w - x3))) <= bound3

    # Straight-through estimator: d(sum(forward(x)))/dx == 1 everywhere.
    g = jax.grad(lambda t: jnp.sum(noquan_forward(
        t, noise_scale=0.074, noise_method='add', noise_range='max',
        seed=3)))(x)
    assert bool(jnp.allclose(g, jnp.ones_like(x)))

    print("KERNEL_OK")
</pallas_src>

<mosaic_0001>
module attributes {stable_mosaic.version = 11 : i64} {
  func.func @_stats_kernel(%arg0: i32, %arg1: memref<16x128xf32, #tpu.memory_space<vmem>>, %arg2: memref<4xf32, #tpu.memory_space<smem>>, %arg3: memref<16x128xf32, #tpu.memory_space<vmem>>) attributes {dimension_semantics = [#tpu.dimension_semantics<arbitrary>], iteration_bounds = array<i64: 1>, scalar_prefetch = 0 : i64, scratch_operands = 1 : i64, tpu.core_type = #tpu.core_type<tc>, window_params = [{transform_indices = @transform_0, window_bounds = array<i64: 16, 128>}, {transform_indices = @transform_1, window_bounds = array<i64: 4>}]} {
    %c0_i32 = arith.constant 0 : i32
    %0 = arith.cmpi eq, %arg0, %c0_i32 : i32
    %1 = arith.extui %0 : i1 to i32
    %c0_i32_0 = arith.constant 0 : i32
    %2 = arith.cmpi ne, %1, %c0_i32_0 : i32
    scf.if %2 {
      %cst = arith.constant 0xFF800000 : f32
      %10 = vector.broadcast %cst : f32 to vector<16x128xf32>
      %c0_8 = arith.constant 0 : index
      %c0_9 = arith.constant 0 : index
      %11 = vector.load %arg3[%c0_8, %c0_9] : memref<16x128xf32, #tpu.memory_space<vmem>>, vector<16x128xf32>
      tpu.vector_store %arg3[%c0_8, %c0_9], %10 {strides = array<i32>} : memref<16x128xf32, #tpu.memory_space<vmem>>, vector<16x128xf32>,
    } else {
    }
    %c0 = arith.constant 0 : index
    %c0_1 = arith.constant 0 : index
    %3 = vector.load %arg1[%c0, %c0_1] : memref<16x128xf32, #tpu.memory_space<vmem>>, vector<16x128xf32>
    %c0_2 = arith.constant 0 : index
    %c0_3 = arith.constant 0 : index
    %4 = vector.load %arg3[%c0_2, %c0_3] : memref<16x128xf32, #tpu.memory_space<vmem>>, vector<16x128xf32>
    %5 = arith.maximumf %4, %3 : vector<16x128xf32>
    %c0_4 = arith.constant 0 : index
    %c0_5 = arith.constant 0 : index
    %6 = vector.load %arg3[%c0_4, %c0_5] : memref<16x128xf32, #tpu.memory_space<vmem>>, vector<16x128xf32>
    tpu.vector_store %arg3[%c0_4, %c0_5], %5 {strides = array<i32>} : memref<16x128xf32, #tpu.memory_space<vmem>>, vector<16x128xf32>,
    %c0_i32_6 = arith.constant 0 : i32
    %7 = arith.cmpi eq, %arg0, %c0_i32_6 : i32
    %8 = arith.extui %7 : i1 to i32
    %c0_i32_7 = arith.constant 0 : i32
    %9 = arith.cmpi ne, %8, %c0_i32_7 : i32
    scf.if %9 {
      %c0_8 = arith.constant 0 : index
      %c0_9 = arith.constant 0 : index
      %10 = vector.load %arg3[%c0_8, %c0_9] : memref<16x128xf32, #tpu.memory_space<vmem>>, vector<16x128xf32>
      %11 = vector.shape_cast %10 : vector<16x128xf32> to vector<1x16x128xf32>
      %cst = arith.constant dense<0xFF800000> : vector<1xf32>
      %12 = vector.multi_reduction <maximumf>, %11, %cst [1, 2] : vector<1x16x128xf32> to vector<1xf32>
      %13 = vector.shape_cast %12 : vector<1xf32> to vector<1x1x1xf32>
      %14 = vector.extract %13[0, 0, 0] : f32 from vector<1x1x1xf32>
      %c0_10 = arith.constant 0 : index
      %15 = memref.load %arg2[%c0_10] : memref<4xf32, #tpu.memory_space<smem>>
      memref.store %14, %arg2[%c0_10] : memref<4xf32, #tpu.memory_space<smem>>
      %cst_11 = arith.constant 0.000000e+00 : f32
      %c1 = arith.constant 1 : index
      %16 = memref.load %arg2[%c1] : memref<4xf32, #tpu.memory_space<smem>>
      memref.store %cst_11, %arg2[%c1] : memref<4xf32, #tpu.memory_space<smem>>
      %cst_12 = arith.constant 0.000000e+00 : f32
      %c2 = arith.constant 2 : index
      %17 = memref.load %arg2[%c2] : memref<4xf32, #tpu.memory_space<smem>>
      memref.store %cst_12, %arg2[%c2] : memref<4xf32, #tpu.memory_space<smem>>
      %cst_13 = arith.constant 0.000000e+00 : f32
      %c3 = arith.constant 3 : index
      %18 = memref.load %arg2[%c3] : memref<4xf32, #tpu.memory_space<smem>>
      memref.store %cst_13, %arg2[%c3] : memref<4xf32, #tpu.memory_space<smem>>
    } else {
    }
    return
  }
  func.func @transform_0(%arg0: i32) -> (i32, i32) {
    %c0_i32 = arith.constant 0 : i32
    %c0_i32_0 = arith.constant 0 : i32
    return %arg0, %c0_i32 : i32, i32
  }
  func.func @transform_1(%arg0: i32) -> i32 {
    %c0_i32 = arith.constant 0 : i32
    %c0_i32_0 = arith.constant 0 : i32
    return %c0_i32 : i32
  }
}

</mosaic_0001>

<bundles_post_ra>
// kernel: tpu_custom_call.1
= control target key start
LH: loop header
LB: loop body
LE: loop exit
PB: predicated region body
PF: predicated region fallthrough
CT: control target
= control target key end

     0   :  { %6 = vsyncpa [#allocation4], 0  ;;  %s134_s0 = inlined_call_operand.hbm [shape: f32[16,128], index: 0, kind: input, shape index: {}]   ;;  %s135_s1 = inlined_call_operand.hbm [shape: f32[4], index: 1, kind: output, shape index: {}]  }
   0x1   :  { %7 = vsyncpa [#allocation5], 0  ;;  %s113_s6 = smov [#allocation3]  }
   0x2   :  { %s13_s7 = sshll.u32 %s113_s6, 4  ;;  %s14_s7 = int_to_ptr.vmem [resolvable:$true] %s13_s7 }
   0x3   :  { %s89_s8 = scalar_lea.vmem %s14_s7, 256  ;;  %p94_p1 = scmp.lt.s32.totalorder %s14_s7, %s14_s7 }
   0x4   :  { %p90_p0 = scmp.ne.s32.totalorder %s14_s7, %s89_s8  ;;  %p95_p2 = scmp.lt.s32.totalorder %s89_s8, %s89_s8 }
   0x6   :  { %p96_p3 = por %p95_p2, %p94_p1 }
   0x8   :  { %p97_p4 = pnand %p96_p3, %p90_p0 }
   0xa   :  { %100 = shalt.err (!%p97_p4)
}
   0xb   :  { %s114_s9 = smov 128   ;;  %s115_s10 = smov 8  }
   0xc   :  { %19 = dma.hbm_to_vmem [thread:$0]  %s134_s0, 256, %s14_s7, [#allocation4], %s114_s9, %s114_s9, %s115_s10  }
   0xd   :  { %109 = dma.done.wait [#allocation4], 256  }
   0xe   :  { %110 = vsyncadd [#allocation4], 4294967040  ;;  %v29_v0 = vld [vmem:[#allocation3] sm:$0xff]  ;;  %v30_v1 = vld [vmem:[#allocation3 + $0x8] sm:$0xff]  ;;  %s116_s13 = smov 0.0   ;;  %s117_s0 = smov [#allocation6]  }
   0xf   :  { %v42_v2 = vmax.f32 %v29_v0, %v30_v1  ;;  %55 = sst [smem:[#allocation6 + $0x1]] %s116_s13 }
  0x10   :  { %57 = sst [smem:[#allocation6 + $0x2]] %s116_s13 }
  0x11   :  { %43 = vmax.xlane.f32.xlu0 %v42_v2  ;;  %59 = sst [smem:[#allocation6 + $0x3]] %s116_s13 }
  0x9a   :  { %v44_v3 = vpop.xlane.xlu0 %43 }
  0x9b   :  { %v45_v4 = vrot.slane %v44_v3, 4 }
  0x9d   :  { %v46_v5 = vmax.f32 %v44_v3, %v45_v4 }
  0x9f   :  { %v47_v6 = vrot.slane %v46_v5, 2 }
  0xa1   :  { %v48_v7 = vmax.f32 %v46_v5, %v47_v6 }
  0xa3   :  { %v49_v8 = vrot.slane %v48_v7, 1 }
  0xa5   :  { %v50_v9 = vmax.f32 %v48_v7, %v49_v8 }
  0xa7   :  { %74 = vpush %v50_v9 }
  0xd8   :  { %s75_s14 = spop %74 }
  0xd9   :  { %53 = sst [smem:[#allocation6]] %s75_s14 }
  0xda   :  { %67 = dma.smem_to_hbm %s117_s0, 16, %s135_s1, [#allocation5]  }
  0xdb   :  { %111 = dma.done.wait [#allocation5], 16  }
  0xdc   :  { %112 = vsyncadd [#allocation5], 4294967280 }
  0xdd   :  { %71 = sfence }
  0xde   :  { %72 = vsyncpa [#allocation4], 1 }
  0xdf   :  { %73 = vsyncpa [#allocation5], 1 }

</bundles_post_ra>
